<compile_context>
chip_gen: v5e
topology: v5e:2x2
jax: 0.10.0
libtpu: 0.0.40
codegen_flags: <defaults>
</compile_context>

<pallas_src>
import jax
import jax.numpy as jnp
from jax.experimental import pallas as pl
from jax.experimental.pallas import tpu as pltpu

K = 5  # Conv1d kernel size of both convs (padding = 2)


def wind_fault_cnn_kernel(x_ref, w1_ref, b1_ref, w2_ref, b2_ref,
                          fc1w_ref, fc1b_ref, fc2w_ref, fc2b_ref,
                          out_ref,
                          pad1, pad2, act1, act2, flat2):
    Bb, L, Cin = x_ref.shape
    L2 = L // 2
    L4 = L // 4
    C1 = b1_ref.shape[-1]   # 16
    C2 = b2_ref.shape[-1]   # 32

    # ---------------- conv1 (Cin -> 16, k=5, pad=2) : one im2col matmul -------
    # Zero only the 2+2 halo rows of each batch element; the interior is fully
    # overwritten each step.  Re-zeroed every step (a few rows, negligible) so
    # the kernel stays correct when the "parallel" batch axis is sharded across
    # TensorCores and a core never executes program_id == 0.
    pad1[:, 0:2, :] = jnp.zeros((Bb, 2, Cin), jnp.float32)
    pad1[:, L + 2:L + 4, :] = jnp.zeros((Bb, 2, Cin), jnp.float32)
    pad1[:, 2:L + 2, :] = x_ref[...]

    cols1 = jnp.concatenate([pad1[:, k:k + L, :] for k in range(K)], axis=-1)
    h1 = jnp.dot(cols1.reshape(Bb * L, K * Cin), w1_ref[...],
                 preferred_element_type=jnp.float32)
    act1[...] = jnp.maximum(h1 + b1_ref[...], 0.0)            # (Bb*L, 16)

    # ---------------- maxpool(kernel=2, stride=2) over length -----------------
    p1 = jnp.maximum(act1[pl.ds(0, Bb * L2, 2), :],
                     act1[pl.ds(1, Bb * L2, 2), :])            # (Bb*L2, 16)

    # ---------------- conv2 (16 -> 32, k=5, pad=2) : one im2col matmul --------
    pad2[:, 0:2, :] = jnp.zeros((Bb, 2, C1), jnp.float32)
    pad2[:, L2 + 2:L2 + 4, :] = jnp.zeros((Bb, 2, C1), jnp.float32)
    pad2[:, 2:L2 + 2, :] = p1.reshape(Bb, L2, C1)

    cols2 = jnp.concatenate([pad2[:, k:k + L2, :] for k in range(K)], axis=-1)
    h2 = jnp.dot(cols2.reshape(Bb * L2, K * C1), w2_ref[...],
                 preferred_element_type=jnp.float32)
    act2[...] = jnp.maximum(h2 + b2_ref[...], 0.0)             # (Bb*L2, 32)

    # ------- maxpool(2,2) + flatten into a lane-dense (Bb, L4*32) tile --------
    # flat2[b, l*32 + c]; the fc1 weight was pre-reordered to this row order,
    # matching PyTorch's channel-major flatten.
    for l in range(L4):
        even = act2[pl.ds(2 * l, Bb, L2), :]                   # rows b*L2 + 2l
        odd = act2[pl.ds(2 * l + 1, Bb, L2), :]                # rows b*L2 + 2l+1
        flat2[:, l * C2:(l + 1) * C2] = jnp.maximum(even, odd)

    # ---------------- fc1 (32*L4 -> 64) + ReLU : single contraction -----------
    f = jnp.dot(flat2[...], fc1w_ref[...], preferred_element_type=jnp.float32)
    f = jnp.maximum(f + fc1b_ref[...], 0.0)                    # (Bb, 64)

    # ---------------- fc2 + softmax over classes ------------------------------
    logits = jnp.dot(f, fc2w_ref[...],
                     preferred_element_type=jnp.float32) + fc2b_ref[...]
    e = jnp.exp(logits - jnp.max(logits, axis=-1, keepdims=True))
    out_ref[...] = e / jnp.sum(e, axis=-1, keepdims=True)


def prepare_params(params, window_size):
    """One-time conversion of PyTorch-layout parameters into kernel layouts
    (hoisted out of the per-call path)."""
    (w1, b1, w2, b2, fc1_w, fc1_b, fc2_w, fc2_b) = params
    L4 = window_size // 4
    c1 = w1.shape[0]            # 16
    c2 = w2.shape[0]            # 32
    cin = w1.shape[1]
    num_classes = fc2_w.shape[0]
    # Conv weights (Cout, Cin, K) -> (K*Cin, Cout), row index = k*Cin + c
    w1c = jnp.transpose(w1, (2, 1, 0)).reshape(K * cin, c1)
    w2c = jnp.transpose(w2, (2, 1, 0)).reshape(K * c1, c2)
    # fc1 columns in torch are channel-major (c*L4 + l); kernel flatten order is
    # (l*32 + c) -> reorder to (L4*32, 64).
    fc1w = jnp.transpose(fc1_w.reshape(64, c2, L4), (2, 1, 0)).reshape(L4 * c2, 64)
    fc2wt = fc2_w.T                                            # (64, classes)
    return (w1c, b1.reshape(1, c1), w2c, b2.reshape(1, c2),
            fc1w, fc1_b.reshape(1, 64), fc2wt, fc2_b.reshape(1, num_classes))


def wind_fault_cnn_forward(x, kernel_params, *, b_block=None):
    """x: (B, window_size, input_channels) float32 — same tensor the torch
    module receives before its internal permute(0, 2, 1)."""
    (w1c, b1r, w2c, b2r, fc1w, fc1br, fc2wt, fc2br) = kernel_params
    B, L, Cin = x.shape
    c1 = b1r.shape[-1]
    c2 = b2r.shape[-1]
    num_classes = fc2br.shape[-1]
    L2, L4 = L // 2, L // 4

    # Batch blocking: enough rows (b_block*L) to fill the MXU M dimension.
    if b_block is None:
        b_block = max(8, pl.cdiv(256, L))
    if b_block >= B:
        b_block = B                              # one grid step, block == batch
    else:
        b_block = ((b_block + 7) // 8) * 8       # sublane-align the output block

    grid_b = pl.cdiv(B, b_block)
    Bp = grid_b * b_block
    if Bp != B:                                  # pad batch to a block multiple
        x = jnp.pad(x, ((0, Bp - B), (0, 0), (0, 0)))

    # TODO(synk): for very large window_size, tile fc1w over an L4 grid axis
    # (accumulator pattern) instead of one VMEM block, to stay within v7x VMEM.
    grid_spec = pltpu.PrefetchScalarGridSpec(
        num_scalar_prefetch=0,
        grid=(grid_b,),
        in_specs=[
            pl.BlockSpec((b_block, L, Cin), lambda b: (b, 0, 0)),
            pl.BlockSpec((K * Cin, c1), lambda b: (0, 0)),
            pl.BlockSpec((1, c1), lambda b: (0, 0)),
            pl.BlockSpec((K * c1, c2), lambda b: (0, 0)),
            pl.BlockSpec((1, c2), lambda b: (0, 0)),
            pl.BlockSpec((L4 * c2, 64), lambda b: (0, 0)),
            pl.BlockSpec((1, 64), lambda b: (0, 0)),
            pl.BlockSpec((64, num_classes), lambda b: (0, 0)),
            pl.BlockSpec((1, num_classes), lambda b: (0, 0)),
        ],
        out_specs=pl.BlockSpec((b_block, num_classes), lambda b: (b, 0)),
        scratch_shapes=[
            pltpu.VMEM((b_block, L + 4, Cin), jnp.float32),   # padded conv1 input
            pltpu.VMEM((b_block, L2 + 4, c1), jnp.float32),   # padded conv2 input
            pltpu.VMEM((b_block * L, c1), jnp.float32),       # relu(conv1)
            pltpu.VMEM((b_block * L2, c2), jnp.float32),      # relu(conv2)
            pltpu.VMEM((b_block, L4 * c2), jnp.float32),      # pooled + flattened
        ],
    )
    out = pl.pallas_call(
        wind_fault_cnn_kernel,
        out_shape=jax.ShapeDtypeStruct((Bp, num_classes), jnp.float32),
        grid_spec=grid_spec,
        compiler_params=pltpu.CompilerParams(
            # batch blocks are independent -> shard across TensorCores on v7x
            dimension_semantics=("parallel",)),
    )(x, w1c, b1r, w2c, b2r, fc1w, fc1br, fc2wt, fc2br)
    return out[:B]


def init_params(key, input_channels, num_classes, window_size):
    """Deterministic synthetic parameters in PyTorch layouts."""
    L4 = window_size // 4
    ks = jax.random.split(key, 8)

    def u(k, shape, fan_in):
        bound = 1.0 / jnp.sqrt(jnp.float32(fan_in))
        return jax.random.uniform(k, shape, jnp.float32, -bound, bound)

    w1 = u(ks[0], (16, input_channels, K), input_channels * K)
    b1 = u(ks[1], (16,), input_channels * K)
    w2 = u(ks[2], (32, 16, K), 16 * K)
    b2 = u(ks[3], (32,), 16 * K)
    fc1_w = u(ks[4], (64, 32 * L4), 32 * L4)
    fc1_b = u(ks[5], (64,), 32 * L4)
    fc2_w = u(ks[6], (num_classes, 64), 64)
    fc2_b = u(ks[7], (num_classes,), 64)
    return (w1, b1, w2, b2, fc1_w, fc1_b, fc2_w, fc2_b)


def reference_forward(x, params):
    """Pure-JAX mirror of the PyTorch forward for validation."""
    (w1, b1, w2, b2, fc1_w, fc1_b, fc2_w, fc2_b) = params
    B, L, _ = x.shape
    xt = jnp.transpose(x, (0, 2, 1))                  # (B, Cin, L) == permute(0,2,1)
    dn = ('NCH', 'OIH', 'NCH')
    h = jax.lax.conv_general_dilated(xt, w1, (1,), [(2, 2)],
                                     dimension_numbers=dn) + b1[None, :, None]
    h = jnp.maximum(h, 0.0)
    h = jnp.max(h.reshape(B, 16, L // 2, 2), axis=-1)
    h = jax.lax.conv_general_dilated(h, w2, (1,), [(2, 2)],
                                     dimension_numbers=dn) + b2[None, :, None]
    h = jnp.maximum(h, 0.0)
    h = jnp.max(h.reshape(B, 32, L // 4, 2), axis=-1)
    f = h.reshape(B, -1)
    f = jnp.maximum(f @ fc1_w.T + fc1_b, 0.0)
    logits = f @ fc2_w.T + fc2_b
    return jax.nn.softmax(logits, axis=1)


if __name__ == "__main__":
    B, Cin, L, num_classes = 2, 4, 16, 3   # batch, input_channels, window_size, classes
    key = jax.random.PRNGKey(0)
    kx, kp = jax.random.split(key)
    x = jax.random.normal(kx, (B, L, Cin), jnp.float32)  # (batch, window, channels)
    params = init_params(kp, Cin, num_classes, L)

    kparams = prepare_params(params, L)      # one-time weight layout prep (hoisted)
    out = wind_fault_cnn_forward(x, kparams)
    out = jax.block_until_ready(out)

    ref = reference_forward(x, params)
    assert out.shape == (B, num_classes)
    assert bool(jnp.allclose(out, ref, atol=1e-5, rtol=1e-5)), (out, ref)
    print("KERNEL_OK")
</pallas_src>

<mosaic_0001>
module attributes {stable_mosaic.version = 11 : i64} {
  func.func @wind_fault_cnn_kernel(%arg0: i32, %arg1: memref<2x16x4xf32, #tpu.memory_space<vmem>>, %arg2: memref<20x16xf32, #tpu.memory_space<vmem>>, %arg3: memref<1x16xf32, #tpu.memory_space<vmem>>, %arg4: memref<80x32xf32, #tpu.memory_space<vmem>>, %arg5: memref<1x32xf32, #tpu.memory_space<vmem>>, %arg6: memref<128x64xf32, #tpu.memory_space<vmem>>, %arg7: memref<1x64xf32, #tpu.memory_space<vmem>>, %arg8: memref<64x3xf32, #tpu.memory_space<vmem>>, %arg9: memref<1x3xf32, #tpu.memory_space<vmem>>, %arg10: memref<2x3xf32, #tpu.memory_space<vmem>>, %arg11: memref<2x20x4xf32, #tpu.memory_space<vmem>>, %arg12: memref<2x12x16xf32, #tpu.memory_space<vmem>>, %arg13: memref<32x16xf32, #tpu.memory_space<vmem>>, %arg14: memref<16x32xf32, #tpu.memory_space<vmem>>, %arg15: memref<2x128xf32, #tpu.memory_space<vmem>>) attributes {dimension_semantics = [#tpu.dimension_semantics<parallel>], iteration_bounds = array<i64: 1>, scalar_prefetch = 0 : i64, scratch_operands = 5 : i64, tpu.core_type = #tpu.core_type<tc>, window_params = [{transform_indices = @transform_0, window_bounds = array<i64: 2, 16, 4>}, {pipeline_mode = #tpu.pipeline_mode<synchronous>, transform_indices = @transform_1, window_bounds = array<i64: 20, 16>}, {pipeline_mode = #tpu.pipeline_mode<synchronous>, transform_indices = @transform_2, window_bounds = array<i64: 1, 16>}, {pipeline_mode = #tpu.pipeline_mode<synchronous>, transform_indices = @transform_3, window_bounds = array<i64: 80, 32>}, {pipeline_mode = #tpu.pipeline_mode<synchronous>, transform_indices = @transform_4, window_bounds = array<i64: 1, 32>}, {pipeline_mode = #tpu.pipeline_mode<synchronous>, transform_indices = @transform_5, window_bounds = array<i64: 128, 64>}, {pipeline_mode = #tpu.pipeline_mode<synchronous>, transform_indices = @transform_6, window_bounds = array<i64: 1, 64>}, {pipeline_mode = #tpu.pipeline_mode<synchronous>, transform_indices = @transform_7, window_bounds = array<i64: 64, 3>}, {pipeline_mode = #tpu.pipeline_mode<synchronous>, transform_indices = @transform_8, window_bounds = array<i64: 1, 3>}, {transform_indices = @transform_9, window_bounds = array<i64: 2, 3>}]} {
    %cst = arith.constant 0.000000e+00 : f32
    %0 = vector.broadcast %cst : f32 to vector<2x2x4xf32>
    %c0 = arith.constant 0 : index
    %c0_0 = arith.constant 0 : index
    %c0_1 = arith.constant 0 : index
    %1 = vector.load %arg11[%c0, %c0_0, %c0_1] : memref<2x20x4xf32, #tpu.memory_space<vmem>>, vector<2x2x4xf32>
    tpu.vector_store %arg11[%c0, %c0_0, %c0_1], %0 {strides = array<i32>} : memref<2x20x4xf32, #tpu.memory_space<vmem>>, vector<2x2x4xf32>,
    %cst_2 = arith.constant 0.000000e+00 : f32
    %2 = vector.broadcast %cst_2 : f32 to vector<2x2x4xf32>
    %c0_3 = arith.constant 0 : index
    %c18 = arith.constant 18 : index
    %c0_4 = arith.constant 0 : index
    %3 = vector.load %arg11[%c0_3, %c18, %c0_4] : memref<2x20x4xf32, #tpu.memory_space<vmem>>, vector<2x2x4xf32>
    tpu.vector_store %arg11[%c0_3, %c18, %c0_4], %2 {strides = array<i32>} : memref<2x20x4xf32, #tpu.memory_space<vmem>>, vector<2x2x4xf32>,
    %c0_5 = arith.constant 0 : index
    %c0_6 = arith.constant 0 : index
    %c0_7 = arith.constant 0 : index
    %4 = vector.load %arg1[%c0_5, %c0_6, %c0_7] : memref<2x16x4xf32, #tpu.memory_space<vmem>>, vector<2x16x4xf32>
    %c0_8 = arith.constant 0 : index
    %c2 = arith.constant 2 : index
    %c0_9 = arith.constant 0 : index
    %5 = vector.load %arg11[%c0_8, %c2, %c0_9] : memref<2x20x4xf32, #tpu.memory_space<vmem>>, vector<2x16x4xf32>
    tpu.vector_store %arg11[%c0_8, %c2, %c0_9], %4 {strides = array<i32>} : memref<2x20x4xf32, #tpu.memory_space<vmem>>, vector<2x16x4xf32>,
    %c0_10 = arith.constant 0 : index
    %c0_11 = arith.constant 0 : index
    %c0_12 = arith.constant 0 : index
    %6 = vector.load %arg11[%c0_10, %c0_11, %c0_12] : memref<2x20x4xf32, #tpu.memory_space<vmem>>, vector<2x16x4xf32>
    %c0_13 = arith.constant 0 : index
    %c1 = arith.constant 1 : index
    %c0_14 = arith.constant 0 : index
    %7 = vector.load %arg11[%c0_13, %c1, %c0_14] : memref<2x20x4xf32, #tpu.memory_space<vmem>>, vector<2x16x4xf32>
    %c0_15 = arith.constant 0 : index
    %c2_16 = arith.constant 2 : index
    %c0_17 = arith.constant 0 : index
    %8 = vector.load %arg11[%c0_15, %c2_16, %c0_17] : memref<2x20x4xf32, #tpu.memory_space<vmem>>, vector<2x16x4xf32>
    %c0_18 = arith.constant 0 : index
    %c3 = arith.constant 3 : index
    %c0_19 = arith.constant 0 : index
    %9 = vector.load %arg11[%c0_18, %c3, %c0_19] : memref<2x20x4xf32, #tpu.memory_space<vmem>>, vector<2x16x4xf32>
    %c0_20 = arith.constant 0 : index
    %c4 = arith.constant 4 : index
    %c0_21 = arith.constant 0 : index
    %10 = vector.load %arg11[%c0_20, %c4, %c0_21] : memref<2x20x4xf32, #tpu.memory_space<vmem>>, vector<2x16x4xf32>
    %11 = tpu.concatenate %6, %7, %8, %9, %10 in 2 : vector<2x16x4xf32>, vector<2x16x4xf32>, vector<2x16x4xf32>, vector<2x16x4xf32>, vector<2x16x4xf32> -> vector<2x16x20xf32>
    %12 = vector.shape_cast %11 : vector<2x16x20xf32> to vector<32x20xf32>
    %c0_22 = arith.constant 0 : index
    %c0_23 = arith.constant 0 : index
    %13 = vector.load %arg2[%c0_22, %c0_23] : memref<20x16xf32, #tpu.memory_space<vmem>>, vector<20x16xf32>
    %cst_24 = arith.constant dense<0.000000e+00> : vector<32x16xf32>
    %14 = tpu.matmul %12, %13, %cst_24 {dimension_numbers = #tpu.dot_dimension_numbers<[1], [0], [0], [1], [0, 0, 1, 1], [], []>} : vector<32x20xf32>, vector<20x16xf32>, vector<32x16xf32> -> vector<32x16xf32>
    %c0_25 = arith.constant 0 : index
    %c0_26 = arith.constant 0 : index
    %15 = vector.load %arg3[%c0_25, %c0_26] : memref<1x16xf32, #tpu.memory_space<vmem>>, vector<1x16xf32>
    %16 = vector.broadcast %15 : vector<1x16xf32> to vector<32x16xf32>
    %17 = arith.addf %14, %16 : vector<32x16xf32>
    %cst_27 = arith.constant 0.000000e+00 : f32
    %18 = vector.broadcast %cst_27 : f32 to vector<32x16xf32>
    %19 = arith.maximumf %17, %18 : vector<32x16xf32>
    %c0_28 = arith.constant 0 : index
    %c0_29 = arith.constant 0 : index
    %20 = vector.load %arg13[%c0_28, %c0_29] : memref<32x16xf32, #tpu.memory_space<vmem>>, vector<32x16xf32>
    tpu.vector_store %arg13[%c0_28, %c0_29], %19 {strides = array<i32>} : memref<32x16xf32, #tpu.memory_space<vmem>>, vector<32x16xf32>,
    %c0_30 = arith.constant 0 : index
    %c0_31 = arith.constant 0 : index
    %21 = tpu.strided_load %arg13[%c0_30, %c0_31] {strides = array<i32: 2, 1>} : memref<32x16xf32, #tpu.memory_space<vmem>>, vector<16x16xf32>
    %c1_32 = arith.constant 1 : index
    %c0_33 = arith.constant 0 : index
    %22 = tpu.strided_load %arg13[%c1_32, %c0_33] {strides = array<i32: 2, 1>} : memref<32x16xf32, #tpu.memory_space<vmem>>, vector<16x16xf32>
    %23 = arith.maximumf %21, %22 : vector<16x16xf32>
    %cst_34 = arith.constant 0.000000e+00 : f32
    %24 = vector.broadcast %cst_34 : f32 to vector<2x2x16xf32>
    %c0_35 = arith.constant 0 : index
    %c0_36 = arith.constant 0 : index
    %c0_37 = arith.constant 0 : index
    %25 = vector.load %arg12[%c0_35, %c0_36, %c0_37] : memref<2x12x16xf32, #tpu.memory_space<vmem>>, vector<2x2x16xf32>
    tpu.vector_store %arg12[%c0_35, %c0_36, %c0_37], %24 {strides = array<i32>} : memref<2x12x16xf32, #tpu.memory_space<vmem>>, vector<2x2x16xf32>,
    %cst_38 = arith.constant 0.000000e+00 : f32
    %26 = vector.broadcast %cst_38 : f32 to vector<2x2x16xf32>
    %c0_39 = arith.constant 0 : index
    %c10 = arith.constant 10 : index
    %c0_40 = arith.constant 0 : index
    %27 = vector.load %arg12[%c0_39, %c10, %c0_40] : memref<2x12x16xf32, #tpu.memory_space<vmem>>, vector<2x2x16xf32>
    tpu.vector_store %arg12[%c0_39, %c10, %c0_40], %26 {strides = array<i32>} : memref<2x12x16xf32, #tpu.memory_space<vmem>>, vector<2x2x16xf32>,
    %28 = vector.shape_cast %23 : vector<16x16xf32> to vector<2x8x16xf32>
    %c0_41 = arith.constant 0 : index
    %c2_42 = arith.constant 2 : index
    %c0_43 = arith.constant 0 : index
    %29 = vector.load %arg12[%c0_41, %c2_42, %c0_43] : memref<2x12x16xf32, #tpu.memory_space<vmem>>, vector<2x8x16xf32>
    tpu.vector_store %arg12[%c0_41, %c2_42, %c0_43], %28 {strides = array<i32>} : memref<2x12x16xf32, #tpu.memory_space<vmem>>, vector<2x8x16xf32>,
    %c0_44 = arith.constant 0 : index
    %c0_45 = arith.constant 0 : index
    %c0_46 = arith.constant 0 : index
    %30 = vector.load %arg12[%c0_44, %c0_45, %c0_46] : memref<2x12x16xf32, #tpu.memory_space<vmem>>, vector<2x8x16xf32>
    %c0_47 = arith.constant 0 : index
    %c1_48 = arith.constant 1 : index
    %c0_49 = arith.constant 0 : index
    %31 = vector.load %arg12[%c0_47, %c1_48, %c0_49] : memref<2x12x16xf32, #tpu.memory_space<vmem>>, vector<2x8x16xf32>
    %c0_50 = arith.constant 0 : index
    %c2_51 = arith.constant 2 : index
    %c0_52 = arith.constant 0 : index
    %32 = vector.load %arg12[%c0_50, %c2_51, %c0_52] : memref<2x12x16xf32, #tpu.memory_space<vmem>>, vector<2x8x16xf32>
    %c0_53 = arith.constant 0 : index
    %c3_54 = arith.constant 3 : index
    %c0_55 = arith.constant 0 : index
    %33 = vector.load %arg12[%c0_53, %c3_54, %c0_55] : memref<2x12x16xf32, #tpu.memory_space<vmem>>, vector<2x8x16xf32>
    %c0_56 = arith.constant 0 : index
    %c4_57 = arith.constant 4 : index
    %c0_58 = arith.constant 0 : index
    %34 = vector.load %arg12[%c0_56, %c4_57, %c0_58] : memref<2x12x16xf32, #tpu.memory_space<vmem>>, vector<2x8x16xf32>
    %35 = tpu.concatenate %30, %31, %32, %33, %34 in 2 : vector<2x8x16xf32>, vector<2x8x16xf32>, vector<2x8x16xf32>, vector<2x8x16xf32>, vector<2x8x16xf32> -> vector<2x8x80xf32>
    %36 = vector.shape_cast %35 : vector<2x8x80xf32> to vector<16x80xf32>
    %c0_59 = arith.constant 0 : index
    %c0_60 = arith.constant 0 : index
    %37 = vector.load %arg4[%c0_59, %c0_60] : memref<80x32xf32, #tpu.memory_space<vmem>>, vector<80x32xf32>
    %cst_61 = arith.constant dense<0.000000e+00> : vector<16x32xf32>
    %38 = tpu.matmul %36, %37, %cst_61 {dimension_numbers = #tpu.dot_dimension_numbers<[1], [0], [0], [1], [0, 0, 1, 1], [], []>} : vector<16x80xf32>, vector<80x32xf32>, vector<16x32xf32> -> vector<16x32xf32>
    %c0_62 = arith.constant 0 : index
    %c0_63 = arith.constant 0 : index
    %39 = vector.load %arg5[%c0_62, %c0_63] : memref<1x32xf32, #tpu.memory_space<vmem>>, vector<1x32xf32>
    %40 = vector.broadcast %39 : vector<1x32xf32> to vector<16x32xf32>
    %41 = arith.addf %38, %40 : vector<16x32xf32>
    %cst_64 = arith.constant 0.000000e+00 : f32
    %42 = vector.broadcast %cst_64 : f32 to vector<16x32xf32>
    %43 = arith.maximumf %41, %42 : vector<16x32xf32>
    %c0_65 = arith.constant 0 : index
    %c0_66 = arith.constant 0 : index
    %44 = vector.load %arg14[%c0_65, %c0_66] : memref<16x32xf32, #tpu.memory_space<vmem>>, vector<16x32xf32>
    tpu.vector_store %arg14[%c0_65, %c0_66], %43 {strides = array<i32>} : memref<16x32xf32, #tpu.memory_space<vmem>>, vector<16x32xf32>,
    %c0_67 = arith.constant 0 : index
    %c0_68 = arith.constant 0 : index
    %45 = tpu.strided_load %arg14[%c0_67, %c0_68] {strides = array<i32: 8, 1>} : memref<16x32xf32, #tpu.memory_space<vmem>>, vector<2x32xf32>
    %c1_69 = arith.constant 1 : index
    %c0_70 = arith.constant 0 : index
    %46 = tpu.strided_load %arg14[%c1_69, %c0_70] {strides = array<i32: 8, 1>} : memref<16x32xf32, #tpu.memory_space<vmem>>, vector<2x32xf32>
    %47 = arith.maximumf %45, %46 : vector<2x32xf32>
    %c0_71 = arith.constant 0 : index
    %c0_72 = arith.constant 0 : index
    %48 = vector.load %arg15[%c0_71, %c0_72] : memref<2x128xf32, #tpu.memory_space<vmem>>, vector<2x32xf32>
    tpu.vector_store %arg15[%c0_71, %c0_72], %47 {strides = array<i32>} : memref<2x128xf32, #tpu.memory_space<vmem>>, vector<2x32xf32>,
    %c2_73 = arith.constant 2 : index
    %c0_74 = arith.constant 0 : index
    %49 = tpu.strided_load %arg14[%c2_73, %c0_74] {strides = array<i32: 8, 1>} : memref<16x32xf32, #tpu.memory_space<vmem>>, vector<2x32xf32>
    %c3_75 = arith.constant 3 : index
    %c0_76 = arith.constant 0 : index
    %50 = tpu.strided_load %arg14[%c3_75, %c0_76] {strides = array<i32: 8, 1>} : memref<16x32xf32, #tpu.memory_space<vmem>>, vector<2x32xf32>
    %51 = arith.maximumf %49, %50 : vector<2x32xf32>
    %c0_77 = arith.constant 0 : index
    %c32 = arith.constant 32 : index
    %52 = vector.load %arg15[%c0_77, %c32] : memref<2x128xf32, #tpu.memory_space<vmem>>, vector<2x32xf32>
    tpu.vector_store %arg15[%c0_77, %c32], %51 {strides = array<i32>} : memref<2x128xf32, #tpu.memory_space<vmem>>, vector<2x32xf32>,
    %c4_78 = arith.constant 4 : index
    %c0_79 = arith.constant 0 : index
    %53 = tpu.strided_load %arg14[%c4_78, %c0_79] {strides = array<i32: 8, 1>} : memref<16x32xf32, #tpu.memory_space<vmem>>, vector<2x32xf32>
    %c5 = arith.constant 5 : index
    %c0_80 = arith.constant 0 : index
    %54 = tpu.strided_load %arg14[%c5, %c0_80] {strides = array<i32: 8, 1>} : memref<16x32xf32, #tpu.memory_space<vmem>>, vector<2x32xf32>
    %55 = arith.maximumf %53, %54 : vector<2x32xf32>
    %c0_81 = arith.constant 0 : index
    %c64 = arith.constant 64 : index
    %56 = vector.load %arg15[%c0_81, %c64] : memref<2x128xf32, #tpu.memory_space<vmem>>, vector<2x32xf32>
    tpu.vector_store %arg15[%c0_81, %c64], %55 {strides = array<i32>} : memref<2x128xf32, #tpu.memory_space<vmem>>, vector<2x32xf32>,
    %c6 = arith.constant 6 : index
    %c0_82 = arith.constant 0 : index
    %57 = tpu.strided_load %arg14[%c6, %c0_82] {strides = array<i32: 8, 1>} : memref<16x32xf32, #tpu.memory_space<vmem>>, vector<2x32xf32>
    %c7 = arith.constant 7 : index
    %c0_83 = arith.constant 0 : index
    %58 = tpu.strided_load %arg14[%c7, %c0_83] {strides = array<i32: 8, 1>} : memref<16x32xf32, #tpu.memory_space<vmem>>, vector<2x32xf32>
    %59 = arith.maximumf %57, %58 : vector<2x32xf32>
    %c0_84 = arith.constant 0 : index
    %c96 = arith.constant 96 : index
    %60 = vector.load %arg15[%c0_84, %c96] : memref<2x128xf32, #tpu.memory_space<vmem>>, vector<2x32xf32>
    tpu.vector_store %arg15[%c0_84, %c96], %59 {strides = array<i32>} : memref<2x128xf32, #tpu.memory_space<vmem>>, vector<2x32xf32>,
    %c0_85 = arith.constant 0 : index
    %c0_86 = arith.constant 0 : index
    %61 = vector.load %arg15[%c0_85, %c0_86] : memref<2x128xf32, #tpu.memory_space<vmem>>, vector<2x128xf32>
    %c0_87 = arith.constant 0 : index
    %c0_88 = arith.constant 0 : index
    %62 = vector.load %arg6[%c0_87, %c0_88] : memref<128x64xf32, #tpu.memory_space<vmem>>, vector<128x64xf32>
    %cst_89 = arith.constant dense<0.000000e+00> : vector<2x64xf32>
    %63 = tpu.matmul %61, %62, %cst_89 {dimension_numbers = #tpu.dot_dimension_numbers<[1], [0], [0], [1], [0, 0, 1, 1], [], []>} : vector<2x128xf32>, vector<128x64xf32>, vector<2x64xf32> -> vector<2x64xf32>
    %c0_90 = arith.constant 0 : index
    %c0_91 = arith.constant 0 : index
    %64 = vector.load %arg7[%c0_90, %c0_91] : memref<1x64xf32, #tpu.memory_space<vmem>>, vector<1x64xf32>
    %65 = vector.broadcast %64 : vector<1x64xf32> to vector<2x64xf32>
    %66 = arith.addf %63, %65 : vector<2x64xf32>
    %cst_92 = arith.constant 0.000000e+00 : f32
    %67 = vector.broadcast %cst_92 : f32 to vector<2x64xf32>
    %68 = arith.maximumf %66, %67 : vector<2x64xf32>
    %c0_93 = arith.constant 0 : index
    %c0_94 = arith.constant 0 : index
    %69 = vector.load %arg8[%c0_93, %c0_94] : memref<64x3xf32, #tpu.memory_space<vmem>>, vector<64x3xf32>
    %cst_95 = arith.constant dense<0.000000e+00> : vector<2x3xf32>
    %70 = tpu.matmul %68, %69, %cst_95 {dimension_numbers = #tpu.dot_dimension_numbers<[1], [0], [0], [1], [0, 0, 1, 1], [], []>} : vector<2x64xf32>, vector<64x3xf32>, vector<2x3xf32> -> vector<2x3xf32>
    %c0_96 = arith.constant 0 : index
    %c0_97 = arith.constant 0 : index
    %71 = vector.load %arg9[%c0_96, %c0_97] : memref<1x3xf32, #tpu.memory_space<vmem>>, vector<1x3xf32>
    %72 = vector.broadcast %71 : vector<1x3xf32> to vector<2x3xf32>
    %73 = arith.addf %70, %72 : vector<2x3xf32>
    %cst_98 = arith.constant dense<0xFF800000> : vector<2xf32>
    %74 = vector.multi_reduction <maximumf>, %73, %cst_98 [1] : vector<2x3xf32> to vector<2xf32>
    %75 = vector.shape_cast %74 : vector<2xf32> to vector<2x1xf32>
    %76 = vector.broadcast %75 : vector<2x1xf32> to vector<2x3xf32>
    %77 = arith.subf %73, %76 : vector<2x3xf32>
    %78 = math.exp %77 : vector<2x3xf32>
    %cst_99 = arith.constant dense<0.000000e+00> : vector<2xf32>
    %79 = vector.multi_reduction <add>, %78, %cst_99 [1] : vector<2x3xf32> to vector<2xf32>
    %80 = vector.shape_cast %79 : vector<2xf32> to vector<2x1xf32>
    %81 = vector.broadcast %80 : vector<2x1xf32> to vector<2x3xf32>
    %82 = arith.divf %78, %81 : vector<2x3xf32>
    %c0_100 = arith.constant 0 : index
    %c0_101 = arith.constant 0 : index
    %83 = vector.load %arg10[%c0_100, %c0_101] : memref<2x3xf32, #tpu.memory_space<vmem>>, vector<2x3xf32>
    tpu.vector_store %arg10[%c0_100, %c0_101], %82 {strides = array<i32>} : memref<2x3xf32, #tpu.memory_space<vmem>>, vector<2x3xf32>,
    return
  }
  func.func @transform_0(%arg0: i32) -> (i32, i32, i32) {
    %c0_i32 = arith.constant 0 : i32
    %c0_i32_0 = arith.constant 0 : i32
    %c0_i32_1 = arith.constant 0 : i32
    return %arg0, %c0_i32, %c0_i32_0 : i32, i32, i32
  }
  func.func @transform_1(%arg0: i32) -> (i32, i32) {
    %c0_i32 = arith.constant 0 : i32
    %c0_i32_0 = arith.constant 0 : i32
    %c0_i32_1 = arith.constant 0 : i32
    return %c0_i32, %c0_i32_0 : i32, i32
  }
  func.func @transform_2(%arg0: i32) -> (i32, i32) {
    %c0_i32 = arith.constant 0 : i32
    %c0_i32_0 = arith.constant 0 : i32
    %c0_i32_1 = arith.constant 0 : i32
    return %c0_i32, %c0_i32_0 : i32, i32
  }
  func.func @transform_3(%arg0: i32) -> (i32, i32) {
    %c0_i32 = arith.constant 0 : i32
    %c0_i32_0 = arith.constant 0 : i32
    %c0_i32_1 = arith.constant 0 : i32
    return %c0_i32, %c0_i32_0 : i32, i32
  }
  func.func @transform_4(%arg0: i32) -> (i32, i32) {
    %c0_i32 = arith.constant 0 : i32
    %c0_i32_0 = arith.constant 0 : i32
    %c0_i32_1 = arith.constant 0 : i32
    return %c0_i32, %c0_i32_0 : i32, i32
  }
  func.func @transform_5(%arg0: i32) -> (i32, i32) {
    %c0_i32 = arith.constant 0 : i32
    %c0_i32_0 = arith.constant 0 : i32
    %c0_i32_1 = arith.constant 0 : i32
    return %c0_i32, %c0_i32_0 : i32, i32
  }
  func.func @transform_6(%arg0: i32) -> (i32, i32) {
    %c0_i32 = arith.constant 0 : i32
    %c0_i32_0 = arith.constant 0 : i32
    %c0_i32_1 = arith.constant 0 : i32
    return %c0_i32, %c0_i32_0 : i32, i32
  }
  func.func @transform_7(%arg0: i32) -> (i32, i32) {
    %c0_i32 = arith.constant 0 : i32
    %c0_i32_0 = arith.constant 0 : i32
    %c0_i32_1 = arith.constant 0 : i32
    return %c0_i32, %c0_i32_0 : i32, i32
  }
  func.func @transform_8(%arg0: i32) -> (i32, i32) {
    %c0_i32 = arith.constant 0 : i32
    %c0_i32_0 = arith.constant 0 : i32
    %c0_i32_1 = arith.constant 0 : i32
    return %c0_i32, %c0_i32_0 : i32, i32
  }
  func.func @transform_9(%arg0: i32) -> (i32, i32) {
    %c0_i32 = arith.constant 0 : i32
    %c0_i32_0 = arith.constant 0 : i32
    return %arg0, %c0_i32 : i32, i32
  }
}

</mosaic_0001>

<bundles_post_ra>
// kernel: tpu_custom_call.1
= control target key start
LH: loop header
LB: loop body
LE: loop exit
PB: predicated region body
PF: predicated region fallthrough
CT: control target
= control target key end

     0   :  { %vm33_vm0 = vcmask 25600   ;;  %vm42_vm1 = vcmask 31744   ;;  %v538_v1 = vmov 0.0   ;;  %s799_s0 = inlined_call_operand.vmem [shape: f32[2,16,4], index: 0, kind: input, shape index: {}]   ;;  %s800_s1 = inlined_call_operand.vmem [shape: f32[20,16], index: 1, kind: input, shape index: {}]   ;;  %s801_s2 = inlined_call_operand.vmem [shape: f32[1,16], index: 2, kind: input, shape index: {}]   ;;  %s802_s3 = inlined_call_operand.vmem [shape: f32[80,32], index: 3, kind: input, shape index: {}]   ;;  %s803_s4 = inlined_call_operand.vmem [shape: f32[1,32], index: 4, kind: input, shape index: {}]   ;;  %s804_s5 = inlined_call_operand.vmem [shape: f32[128,64], index: 5, kind: input, shape index: {}]   ;;  %s805_s6 = inlined_call_operand.vmem [shape: f32[1,64], index: 6, kind: input, shape index: {}]   ;;  %s806_s7 = inlined_call_operand.vmem [shape: f32[64,3], index: 7, kind: input, shape index: {}]   ;;  %s807_s8 = inlined_call_operand.vmem [shape: f32[1,3], index: 8, kind: input, shape index: {}]   ;;  %s808_s9 = inlined_call_operand.hbm [shape: f32[2,3], index: 9, kind: output, shape index: {}]  }
   0x1   :  { %v38_v0 = vld [vmem:[%s799_s0] sm:$0xff]  ;;  %34 = vst.msk [vmem:[#allocation2] sm:$0x3] %vm33_vm0, %v538_v1  ;;  %v39_v2 = vld [vmem:[%s799_s0 + $0x8] sm:$0xff]  ;;  %v40_v3 = vld [vmem:[%s799_s0 + $0x10] sm:$0xff] }
   0x2   :  { %43 = vst.msk [vmem:[#allocation2 + $0x2] sm:$0xff] %vm42_vm1, %v38_v0 }
   0x3   :  { %35 = vst.msk [vmem:[#allocation2 + $0x18] sm:$0x3] %vm33_vm0, %v538_v1 }
   0x4   :  { %36 = vst.msk [vmem:[#allocation2 + $0x12] sm:$0x3] %vm33_vm0, %v538_v1 }
   0x5   :  { %14 = vsyncpa [#allocation8], 0  ;;  %37 = vst.msk [vmem:[#allocation2 + $0x2a] sm:$0x3] %vm33_vm0, %v538_v1  ;;  %v41_v4 = vld [vmem:[%s799_s0 + $0x18] sm:$0xff]  ;;  %s539_s17 = smov 4  }
   0x6   :  { %44 = vst.msk [vmem:[#allocation2 + $0xa] sm:$0xff] %vm42_vm1, %v39_v2  ;;  %s540_s18 = smov 12   ;;  %s541_s19 = smov 8   ;;  %v152_v21 = vld [vmem:[%s800_s1 + $0x10] sm:$0xf]  ;;  %vm170_vm2 = vcmask 1043456  }
   0x7   :  { %45 = vst.msk [vmem:[#allocation2 + $0x1a] sm:$0xff] %vm42_vm1, %v40_v3  ;;  %s542_s0 = smov 16   ;;  %486 = vmatpush.msk.msra.mxu0 %vm170_vm2, %v152_v21  ;;  %v151_v22 = vld [vmem:[%s800_s1 + $0x8] sm:$0xff]  ;;  %v150_v23 = vld [vmem:[%s800_s1] sm:$0xff]  ;;  %vm135_vm3 = vcmask 64512   ;;  %vm140_vm4 = vcmask 97280  }
   0x8   :  { %46 = vst.msk [vmem:[#allocation2 + $0x22] sm:$0xff] %vm42_vm1, %v41_v4  ;;  %vm145_vm5 = vcmask 130048   ;;  %vm157_vm6 = vcmask 162816   ;;  %vm220_vm7 = vcmask 123904   ;;  %v504_v60 = vld [vmem:[%s801_s2] ss:$0 sm:$0xff] }
   0x9   :  { %v51_v5 = vld [vmem:[#allocation2 + $0x1] sm:$0xff]  ;;  %188 = vmatpush.msra.mxu0 %v151_v22  ;;  %223 = vst.msk [vmem:[#allocation3 + $0xa] sm:$0x3] %vm220_vm7, %v538_v1  ;;  %s543_s2 = smov 48   ;;  %s544_s27 = smov 32   ;;  %vm271_vm8 = vcmask 261120  }
   0xa   :  { %71 = vrot.lane.b32.xlu0 %v51_v5, %s539_s17  ;;  %v55_v8 = vld [vmem:[#allocation2 + $0x2] sm:$0xff]  ;;  %221 = vst.msk [vmem:[#allocation3] sm:$0x3] %vm220_vm7, %v538_v1  ;;  %s545_s28 = smov 64   ;;  %vm274_vm9 = vcmask 392192   ;;  %vm277_vm10 = vcmask 523264  }
   0xb   :  { %189 = vmatpush.msra.mxu0 %v150_v23  ;;  %v47_v27 = vld [vmem:[#allocation2] sm:$0xff]  ;;  %222 = vst.msk [vmem:[#allocation3 + $0x10] sm:$0x3] %vm220_vm7, %v538_v1  ;;  %v289_v23 = vld [vmem:[%s802_s3 + $0x48] sm:$0xff]  ;;  %vm294_vm11 = vcmask 654336   ;;  %vm332_vm12 = vcmask 254976  }
   0xc   :  { %224 = vst.msk [vmem:[#allocation3 + $0x1a] sm:$0x3] %vm220_vm7, %v538_v1  ;;  %307 = vmatpush.msra.mxu1 %v289_v23  ;;  %v415_v23 = vld [vmem:[%s806_s7 + $0x30] sm:$0xff]  ;;  %vm343_vm13 = vcmask 517376   ;;  %vm354_vm14 = vcmask 779776   ;;  %vm365_vm15 = vcmask 1042176  }
   0xd   :  { %v59_v6 = vld [vmem:[#allocation2 + $0x3] sm:$0xff]  ;;  %v60_v11 = vld [vmem:[#allocation2 + $0xb] sm:$0xff]  ;;  %vm444_vm0 = vcmask 17408  }
   0xe   :  { %103 = vrot.lane.b32.xlu1 %v59_v6, %s540_s18  ;;  %v52_v7 = vld [vmem:[#allocation2 + $0x9] sm:$0xff]  ;;  %v53_v13 = vld [vmem:[#allocation2 + $0x19] sm:$0xff] }
   0xf   :  { %73 = vrot.lane.b32.xlu2 %v52_v7, %s539_s17  ;;  %v63_v9 = vld [vmem:[#allocation2 + $0x4] sm:$0xff]  ;;  %v64_v12 = vld [vmem:[#allocation2 + $0xc] sm:$0xff]  ;;  %v57_v14 = vld [vmem:[#allocation2 + $0x1a] sm:$0xff] }
  0x10   :  { %v56_v10 = vld [vmem:[#allocation2 + $0xa] sm:$0xff]  ;;  %v61_v15 = vld [vmem:[#allocation2 + $0x1b] sm:$0xff] }
  0x11   :  { %v65_v16 = vld [vmem:[#allocation2 + $0x1c] sm:$0xff]  ;;  %v66_v20 = vld [vmem:[#allocation2 + $0x24] sm:$0xff] }
  0x12   :  { %87 = vrot.lane.b32.xlu0 %v55_v8, %s541_s19  ;;  %v54_v17 = vld [vmem:[#allocation2 + $0x21] sm:$0xff]  ;;  %v49_v42 = vld [vmem:[#allocation2 + $0x18] sm:$0xff] }
  0x13   :  { %v58_v18 = vld [vmem:[#allocation2 + $0x22] sm:$0xff] }
  0x14   :  { %v62_v19 = vld [vmem:[#allocation2 + $0x23] sm:$0xff] }
  0x15   :  { %v48_v33 = vld [vmem:[#allocation2 + $0x8] sm:$0xff]  ;;  %v50_v51 = vld [vmem:[#allocation2 + $0x20] sm:$0xff] }
  0x16   :  { %119 = vrot.lane.b32.xlu1 %v63_v9, %s542_s0 }
  0x17   :  { %89 = vrot.lane.b32.xlu2 %v56_v10, %s541_s19 }
  0x1a   :  { %105 = vrot.lane.b32.xlu0 %v60_v11, %s540_s18 }
  0x1e   :  { %121 = vrot.lane.b32.xlu1 %v64_v12, %s542_s0 }
  0x1f   :  { %75 = vrot.lane.b32.xlu2 %v53_v13, %s539_s17 }
  0x22   :  { %91 = vrot.lane.b32.xlu0 %v57_v14, %s541_s19 }
  0x26   :  { %107 = vrot.lane.b32.xlu1 %v61_v15, %s540_s18 }
  0x27   :  { %123 = vrot.lane.b32.xlu2 %v65_v16, %s542_s0 }
  0x2a   :  { %77 = vrot.lane.b32.xlu0 %v54_v17, %s539_s17 }
  0x2e   :  { %93 = vrot.lane.b32.xlu1 %v58_v18, %s541_s19 }
  0x2f   :  { %109 = vrot.lane.b32.xlu2 %v62_v19, %s540_s18 }
  0x32   :  { %125 = vrot.lane.b32.xlu0 %v66_v20, %s542_s0 }
  0x69   :  { %v74_v24 = vpop.permute.xlu2 %73 }
  0x6a   :  { %v132_v36 = vsel %vm42_vm1, %v48_v33, %v74_v24  ;;  %v288_v24 = vld [vmem:[%s802_s3 + $0x40] sm:$0xff] }
  0x6b   :  { %308 = vmatpush.msra.mxu1 %v288_v24  ;;  %v414_v24 = vld [vmem:[%s806_s7 + $0x28] sm:$0xff] }
  0x71   :  { %v90_v30 = vpop.permute.xlu2 %89 }
  0x72   :  { %v137_v38 = vsel %vm135_vm3, %v132_v36, %v90_v30  ;;  %v282_v30 = vld [vmem:[%s802_s3 + $0x10] sm:$0xff] }
  0x79   :  { %v76_v39 = vpop.permute.xlu2 %75 }
  0x7a   :  { %v133_v44 = vsel %vm42_vm1, %v49_v42, %v76_v39 }
  0x7c   :  { %v72_v25 = vpop.permute.xlu0 %71 }
  0x7d   :  { %v131_v28 = vsel %vm42_vm1, %v47_v27, %v72_v25  ;;  %v287_v25 = vld [vmem:[%s802_s3 + $0x38] sm:$0xff]  ;;  %v285_v27 = vld [vmem:[%s802_s3 + $0x28] sm:$0xff] }
  0x7e   :  { %309 = vmatpush.msra.mxu1 %v287_v25  ;;  %v413_v25 = vld [vmem:[%s806_s7 + $0x20] sm:$0xff] }
  0x80   :  { %v104_v26 = vpop.permute.xlu1 %103 }
  0x81   :  { %v124_v47 = vpop.permute.xlu2 %123 }
  0x84   :  { %v88_v29 = vpop.permute.xlu0 %87 }
  0x85   :  { %v136_v31 = vsel %vm135_vm3, %v131_v28, %v88_v29  ;;  %v284_v28 = vld [vmem:[%s802_s3 + $0x20] sm:$0xff]  ;;  %v283_v29 = vld [vmem:[%s802_s3 + $0x18] sm:$0xff] }
  0x86   :  { %v141_v32 = vsel %vm140_vm4, %v136_v31, %v104_v26  ;;  %v286_v26 = vld [vmem:[%s802_s3 + $0x30] sm:$0xff]  ;;  %v281_v31 = vld [vmem:[%s802_s3 + $0x8] sm:$0xff] }
  0x87   :  { %310 = vmatpush.msra.mxu1 %v286_v26  ;;  %v412_v26 = vld [vmem:[%s806_s7 + $0x18] sm:$0xff] }
  0x88   :  { %v120_v34 = vpop.permute.xlu1 %119 }
  0x89   :  { %v146_v35 = vsel %vm145_vm5, %v141_v32, %v120_v34  ;;  %v110_v56 = vpop.permute.xlu2 %109  ;;  %311 = vmatpush.msra.mxu1 %v285_v27  ;;  %v280_v32 = vld [vmem:[%s802_s3] sm:$0xff] }
  0x8a   :  { %487 = vmatmul.msk.f32.vlgmr.msra.gmra.mxu0 %vm157_vm6, %v146_v35 }
  0x8b   :  { %312 = vmatpush.msra.mxu1 %v284_v28 }
  0x8c   :  { %v106_v37 = vpop.permute.xlu0 %105 }
  0x8d   :  { %v142_v40 = vsel %vm140_vm4, %v137_v38, %v106_v37  ;;  %313 = vmatpush.msra.mxu1 %v283_v29 }
  0x8f   :  { %314 = vmatpush.msra.mxu1 %v282_v30 }
  0x90   :  { %v122_v41 = vpop.permute.xlu1 %121 }
  0x91   :  { %v147_v43 = vsel %vm145_vm5, %v142_v40, %v122_v41  ;;  %315 = vmatpush.msra.mxu1 %v281_v31  ;;  %v411_v31 = vld [vmem:[%s806_s7 + $0x10] sm:$0xff] }
  0x92   :  { %488 = vmatmul.msk.f32.gmra.mxu0 %vm157_vm6, %v147_v43 }
  0x93   :  { %316 = vmatpush.msra.mxu1 %v280_v32  ;;  %v410_v32 = vld [vmem:[%s806_s7 + $0x8] sm:$0xff] }
  0x94   :  { %v92_v45 = vpop.permute.xlu0 %91 }
  0x95   :  { %v138_v46 = vsel %vm135_vm3, %v133_v44, %v92_v45 }
  0x98   :  { %v108_v48 = vpop.permute.xlu1 %107 }
  0x99   :  { %v143_v49 = vsel %vm140_vm4, %v138_v46, %v108_v48 }
  0x9a   :  { %v148_v50 = vsel %vm145_vm5, %v143_v49, %v124_v47 }
  0x9b   :  { %489 = vmatmul.msk.f32.gmra.mxu0 %vm157_vm6, %v148_v50 }
  0x9c   :  { %v78_v52 = vpop.permute.xlu0 %77 }
  0x9d   :  { %v134_v53 = vsel %vm42_vm1, %v50_v51, %v78_v52  ;;  %v505_v51 = vld [vmem:[%s803_s4] ss:$0 sm:$0xff]  ;;  %s546_s4 = smov 96  }
  0xa0   :  { %v94_v54 = vpop.permute.xlu1 %93 }
  0xa1   :  { %v139_v55 = vsel %vm135_vm3, %v134_v53, %v94_v54 }
  0xa2   :  { %v144_v57 = vsel %vm140_vm4, %v139_v55, %v110_v56 }
  0xa4   :  { %v126_v58 = vpop.permute.xlu0 %125 }
  0xa5   :  { %v149_v59 = vsel %vm145_vm5, %v144_v57, %v126_v58 }
  0xa6   :  { %490 = vmatmul.msk.f32.gmra.mxu0 %vm157_vm6, %v149_v59 }
 0x107   :  { %v191_v61 = vpop.f32.mrf.mxu0 }
 0x108   :  { %v192_v62 = vadd.f32 %v504_v60, %v191_v61 }
 0x10a   :  { %v203_v63 = vmax.f32 %v192_v62, 0.0 }
 0x10c   :  { %207 = vst.msk [vmem:[#allocation4] sm:$0xff] %vm145_vm5, %v203_v63 }
 0x10f   :  { %v194_v0 = vpop.f32.mrf.mxu0 }
 0x110   :  { %v195_v2 = vadd.f32 %v504_v60, %v194_v0 }
 0x112   :  { %v204_v3 = vmax.f32 %v195_v2, 0.0 }
 0x114   :  { %208 = vst.msk [vmem:[#allocation4 + $0x8] sm:$0xff] %vm145_vm5, %v204_v3 }
 0x118   :  { %v197_v4 = vpop.f32.mrf.mxu0 }
 0x119   :  { %v198_v5 = vadd.f32 %v504_v60, %v197_v4 }
 0x11b   :  { %v211_v6 = vld [vmem:[#allocation4] ss:$2 sm:$0xff]  ;;  %v215_v7 = vld [vmem:[#allocation4 + $0x1] ss:$2 sm:$0xff]  ;;  %v205_v8 = vmax.f32 %v198_v5, 0.0 }
 0x11c   :  { %v218_v1 = vmax.f32 %v211_v6, %v215_v7  ;;  %v383_v7 = vld [vmem:[%s804_s5 + $0x78] sm:$0xff] }
 0x11d   :  { %209 = vst.msk [vmem:[#allocation4 + $0x10] sm:$0xff] %vm145_vm5, %v205_v8  ;;  %v382_v8 = vld [vmem:[%s804_s5 + $0x70] sm:$0xff]  ;;  %388 = vmatpush.msra.mxu2 %v383_v7 }
 0x11e   :  { %225 = vst.msk [vmem:[#allocation3 + $0x2] sm:$0xff] %vm145_vm5, %v218_v1  ;;  %v381_v1 = vld [vmem:[%s804_s5 + $0x68] sm:$0xff] }
 0x11f   :  { %389 = vmatpush.msra.mxu2 %v382_v8 }
 0x121   :  { %390 = vmatpush.msra.mxu2 %v381_v1 }
 0x123   :  { %v200_v9 = vpop.f32.mrf.mxu0 }
 0x124   :  { %v201_v10 = vadd.f32 %v504_v60, %v200_v9  ;;  %v380_v9 = vld [vmem:[%s804_s5 + $0x60] sm:$0xff] }
 0x125   :  { %v233_v11 = vld [vmem:[#allocation3 + $0x3] sm:$0xff]  ;;  %391 = vmatpush.msra.mxu2 %v380_v9 }
 0x126   :  { %v231_v12 = vld [vmem:[#allocation3 + $0x2] sm:$0xff]  ;;  %v206_v14 = vmax.f32 %v201_v10, 0.0  ;;  %255 = vrot.lane.b32.xlu0 %v233_v11, %s543_s2 }
 0x127   :  { %v229_v13 = vld [vmem:[#allocation3 + $0x1] sm:$0xff]  ;;  %247 = vrot.lane.b32.xlu2 %v231_v12, %s544_s27  ;;  %v377_v12 = vld [vmem:[%s804_s5 + $0x48] sm:$0xff] }
 0x128   :  { %239 = vrot.lane.b32.xlu1 %v229_v13, %s542_s0  ;;  %210 = vst.msk [vmem:[#allocation4 + $0x18] sm:$0xff] %vm145_vm5, %v206_v14  ;;  %v235_v15 = vld [vmem:[#allocation3 + $0x4] sm:$0xff]  ;;  %v376_v13 = vld [vmem:[%s804_s5 + $0x40] sm:$0xff] }
 0x129   :  { %v227_v34 = vld [vmem:[#allocation3] sm:$0xff]  ;;  %v379_v10 = vld [vmem:[%s804_s5 + $0x58] sm:$0xff] }
 0x12a   :  { %v378_v11 = vld [vmem:[%s804_s5 + $0x50] sm:$0xff]  ;;  %392 = vmatpush.msra.mxu2 %v379_v10  ;;  %v375_v14 = vld [vmem:[%s804_s5 + $0x38] sm:$0xff] }
 0x12c   :  { %393 = vmatpush.msra.mxu2 %v378_v11 }
 0x12e   :  { %394 = vmatpush.msra.mxu2 %v377_v12 }
 0x12f   :  { %v213_v16 = vld [vmem:[#allocation4 + $0x10] ss:$2 sm:$0xff]  ;;  %v217_v17 = vld [vmem:[#allocation4 + $0x11] ss:$2 sm:$0xff] }
 0x130   :  { %263 = vrot.lane.b32.xlu1 %v235_v15, %s545_s28  ;;  %v219_v18 = vmax.f32 %v213_v16, %v217_v17  ;;  %395 = vmatpush.msra.mxu2 %v376_v13  ;;  %v374_v15 = vld [vmem:[%s804_s5 + $0x30] sm:$0xff]  ;;  %v373_v16 = vld [vmem:[%s804_s5 + $0x28] sm:$0xff]  ;;  %v372_v17 = vld [vmem:[%s804_s5 + $0x20] sm:$0xff] }
 0x132   :  { %226 = vst.msk [vmem:[#allocation3 + $0x12] sm:$0xff] %vm145_vm5, %v219_v18  ;;  %396 = vmatpush.msra.mxu2 %v375_v14  ;;  %v371_v18 = vld [vmem:[%s804_s5 + $0x18] sm:$0xff] }
 0x134   :  { %397 = vmatpush.msra.mxu2 %v374_v15 }
 0x136   :  { %398 = vmatpush.msra.mxu2 %v373_v16 }
 0x138   :  { %399 = vmatpush.msra.mxu2 %v372_v17 }
 0x139   :  { %v232_v19 = vld [vmem:[#allocation3 + $0x12] sm:$0xff] }
 0x13a   :  { %v230_v20 = vld [vmem:[#allocation3 + $0x11] sm:$0xff]  ;;  %249 = vrot.lane.b32.xlu0 %v232_v19, %s544_s27  ;;  %v370_v19 = vld [vmem:[%s804_s5 + $0x10] sm:$0xff]  ;;  %400 = vmatpush.msra.mxu2 %v371_v18 }
 0x13b   :  { %v234_v21 = vld [vmem:[#allocation3 + $0x13] sm:$0xff]  ;;  %241 = vrot.lane.b32.xlu2 %v230_v20, %s542_s0 }
 0x13c   :  { %257 = vrot.lane.b32.xlu1 %v234_v21, %s543_s2  ;;  %v236_v22 = vld [vmem:[#allocation3 + $0x14] sm:$0xff]  ;;  %401 = vmatpush.msra.mxu2 %v370_v19  ;;  %s477_s2 = sshll.u32 %s808_s9, 4  ;;  %s478_s2 = int_to_ptr.hbm [resolvable:$true] %s477_s2 }
 0x13d   :  { %v228_v43 = vld [vmem:[#allocation3 + $0x10] sm:$0xff]  ;;  %v369_v20 = vld [vmem:[%s804_s5 + $0x8] sm:$0xff] }
 0x13e   :  { %v368_v21 = vld [vmem:[%s804_s5] sm:$0xff]  ;;  %402 = vmatpush.msra.mxu2 %v369_v20 }
 0x140   :  { %403 = vmatpush.msra.mxu2 %v368_v21 }
 0x143   :  { %265 = vrot.lane.b32.xlu2 %v236_v22, %s545_s28  ;;  %v416_v22 = vld [vmem:[%s806_s7 + $0x38] sm:$0xff] }
 0x144   :  { %432 = vmatpush.msra.mxu3 %v416_v22 }
 0x146   :  { %433 = vmatpush.msra.mxu3 %v415_v23 }
 0x148   :  { %434 = vmatpush.msra.mxu3 %v414_v24 }
 0x14a   :  { %435 = vmatpush.msra.mxu3 %v413_v25 }
 0x14c   :  { %436 = vmatpush.msra.mxu3 %v412_v26 }
 0x14e   :  { %437 = vmatpush.msra.mxu3 %v411_v31 }
 0x150   :  { %438 = vmatpush.msra.mxu3 %v410_v32 }
 0x181   :  { %v248_v36 = vpop.permute.xlu2 %247 }
 0x195   :  { %v242_v42 = vpop.permute.xlu2 %241 }
 0x196   :  { %v270_v44 = vsel %vm145_vm5, %v228_v43, %v242_v42 }
 0x198   :  { %v256_v38 = vpop.permute.xlu0 %255 }
 0x19a   :  { %v240_v33 = vpop.permute.xlu1 %239 }
 0x19b   :  { %v269_v35 = vsel %vm145_vm5, %v227_v34, %v240_v33  ;;  %v409_v33 = vld [vmem:[%s806_s7] sm:$0xff] }
 0x19c   :  { %v272_v37 = vsel %vm271_vm8, %v269_v35, %v248_v36  ;;  %439 = vmatpush.msra.mxu3 %v409_v33  ;;  %v506_v34 = vld [vmem:[%s805_s6] ss:$0 sm:$0xff]  ;;  %s547_s6 = smov [#allocation7]  }
 0x19d   :  { %v275_v40 = vsel %vm274_vm9, %v272_v37, %v256_v38  ;;  %v266_v48 = vpop.permute.xlu2 %265  ;;  %v507_v38 = vld [vmem:[%s807_s8] ss:$0 sm:$0xff]  ;;  %s475_s7 = sshll.u32 %s547_s6, 4  ;;  %s476_s7 = int_to_ptr.vmem [resolvable:$true] %s475_s7 }
 0x1a2   :  { %v264_v39 = vpop.permute.xlu1 %263 }
 0x1a3   :  { %v278_v41 = vsel %vm277_vm10, %v275_v40, %v264_v39 }
 0x1a4   :  { %491 = vmatmul.msk.f32.vlgmr.msra.gmra.mxu1 %vm294_vm11, %v278_v41 }
 0x1ac   :  { %v250_v45 = vpop.permute.xlu0 %249 }
 0x1ad   :  { %v273_v46 = vsel %vm271_vm8, %v270_v44, %v250_v45 }
 0x1ae   :  { %v258_v47 = vpop.permute.xlu1 %257 }
 0x1af   :  { %v276_v49 = vsel %vm274_vm9, %v273_v46, %v258_v47 }
 0x1b0   :  { %v279_v50 = vsel %vm277_vm10, %v276_v49, %v266_v48 }
 0x1b1   :  { %492 = vmatmul.msk.f32.gmra.mxu1 %vm294_vm11, %v279_v50 }
 0x221   :  { %v318_v52 = vpop.f32.mrf.mxu1 }
 0x222   :  { %v319_v53 = vadd.f32 %v505_v51, %v318_v52 }
 0x224   :  { %v324_v54 = vmax.f32 %v319_v53, 0.0 }
 0x226   :  { %326 = vst.msk [vmem:[#allocation5] sm:$0xff] %vm271_vm8, %v324_v54 }
 0x22e   :  { %v321_v55 = vpop.f32.mrf.mxu1 }
 0x22f   :  { %v322_v56 = vadd.f32 %v505_v51, %v321_v55 }
 0x231   :  { %v325_v57 = vmax.f32 %v322_v56, 0.0 }
 0x233   :  { %327 = vst.msk [vmem:[#allocation5 + $0x8] sm:$0xff] %vm271_vm8, %v325_v57 }
 0x23a   :  { %v357_v58 = vld [vmem:[#allocation5 + $0x6] ss:$8 sm:$0x3]  ;;  %v359_v59 = vld [vmem:[#allocation5 + $0x7] ss:$8 sm:$0x3] }
 0x23b   :  { %v360_v60 = vmax.f32 %v357_v58, %v359_v59  ;;  %v346_v61 = vld [vmem:[#allocation5 + $0x4] ss:$8 sm:$0x3]  ;;  %v348_v62 = vld [vmem:[#allocation5 + $0x5] ss:$8 sm:$0x3] }
 0x23c   :  { %v349_v63 = vmax.f32 %v346_v61, %v348_v62  ;;  %v335_v0 = vld [vmem:[#allocation5 + $0x2] ss:$8 sm:$0x3]  ;;  %v337_v2 = vld [vmem:[#allocation5 + $0x3] ss:$8 sm:$0x3] }
 0x23d   :  { %362 = vrot.lane.b32.xlu2 %v360_v60, %s546_s4  ;;  %v338_v3 = vmax.f32 %v335_v0, %v337_v2  ;;  %v328_v4 = vld [vmem:[#allocation5] ss:$8 sm:$0x3]  ;;  %v330_v5 = vld [vmem:[#allocation5 + $0x1] ss:$8 sm:$0x3] }
 0x23e   :  { %351 = vrot.lane.b32.xlu1 %v349_v63, %s545_s28  ;;  %v331_v6 = vmax.f32 %v328_v4, %v330_v5 }
 0x23f   :  { %340 = vrot.lane.b32.xlu0 %v338_v3, %s544_s27 }
 0x240   :  { %333 = vst.msk [vmem:[#allocation6] sm:$0x3] %vm332_vm12, %v331_v6 }
 0x297   :  { %v363_v29 = vpop.permute.xlu2 %362 }
 0x2b0   :  { %v352_v27 = vpop.permute.xlu1 %351 }
 0x2b1   :  { %v341_v28 = vpop.permute.xlu0 %340 }
 0x2b2   :  { %344 = vst.msk [vmem:[#allocation6] sm:$0x3] %vm343_vm13, %v341_v28 }
 0x2b3   :  { %355 = vst.msk [vmem:[#allocation6] sm:$0x3] %vm354_vm14, %v352_v27 }
 0x2b4   :  { %366 = vst.msk [vmem:[#allocation6] sm:$0x3] %vm365_vm15, %v363_v29 }
 0x2bb   :  { %v367_v30 = vld [vmem:[#allocation6] sm:$0x3] }
 0x2bc   :  { %404 = vmatmul.f32.vlgmr.msra.gmra.mxu2 %v367_v30 }
 0x33f   :  { %v405_v35 = vpop.f32.mrf.mxu2 }
 0x340   :  { %v406_v36 = vadd.f32 %v506_v34, %v405_v35 }
 0x342   :  { %v408_v37 = vmax.f32 %v406_v36, 0.0 }
 0x344   :  { %493 = vmatmul.msk.f32.vlgmr.msra.gmra.mxu3 %vm277_vm10, %v408_v37 }
 0x3c7   :  { %v441_v39 = vpop.f32.mrf.mxu3 }
 0x3c8   :  { %v442_v40 = vadd.f32 %v507_v38, %v441_v39 }
 0x3ca   :  { %v445_v41 = vsel %vm444_vm0, %v442_v40, -inf }
 0x3cb   :  { %446 = vmax.xlane.f32.xlu0 %v445_v41 }
 0x43e   :  { %v447_v42 = vpop.xlane.xlu0 %446 }
 0x43f   :  { %v448_v43 = vsub.f32 %v442_v40, %v447_v42 }
 0x441   :  { %v449_v44 = vmul.f32 1.442695, %v448_v43 }
 0x443   :  { %508 = vpow2.f32 %v449_v44 }
 0x449   :  { %v509_v45 = vpop.eup %508 }
 0x44a   :  { %v451_v46 = vsel %vm444_vm0, %v509_v45, 0.0 }
 0x44b   :  { %452 = vadd.xlane.f32.xlu1 %v451_v46 }
 0x4be   :  { %v453_v47 = vpop.xlane.xlu1 %452 }
 0x4bf   :  { %510 = vrcp.f32 %v453_v47  ;;  %v465_v51 = vand.u32 2147483648, %v453_v47  ;;  %v463_v53 = vand.u32 2147483647, %v453_v47  ;;  %vm459_vm2 = vweird.f32 %v453_v47 }
 0x4c1   :  { %v466_v55 = vor.u32 1.1754944e-38, %v465_v51  ;;  %vm464_vm4 = vcmp.eq.f32.partialorder %v463_v53, 8.507059e+37 }
 0x4c5   :  { %v511_v48 = vpop.eup %510 }
 0x4c6   :  { %v455_v49 = vmul.f32 %v511_v48, %v453_v47  ;;  %vm460_vm1 = vweird.f32 %v511_v48 }
 0x4c7   :  { %vm461_vm3 = vmor %vm459_vm2, %vm460_vm1 }
 0x4c8   :  { %v456_v50 = vsub.f32 1.0, %v455_v49 }
 0x4ca   :  { %v457_v52 = vmul.f32 %v511_v48, %v456_v50 }
 0x4cc   :  { %v458_v54 = vadd.f32 %v511_v48, %v457_v52 }
 0x4ce   :  { %v462_v56 = vsel %vm461_vm3, %v511_v48, %v458_v54 }
 0x4cf   :  { %v467_v57 = vsel %vm464_vm4, %v466_v55, %v462_v56 }
 0x4d0   :  { %v468_v58 = vmul.f32 %v509_v45, %v467_v57 }
 0x4d2   :  { %469 = vst.msk [vmem:[#allocation7] sm:$0x3] %vm444_vm0, %v468_v58 }
 0x4d3   :  { %480 = dma.vmem_to_hbm [thread:$0]  %s476_s7, 32, %s478_s2, [#allocation8]  }
 0x4d4   :  { %536 = dma.done.wait [#allocation8], 32  }
 0x4d5   :  { %537 = vsyncadd [#allocation8], 4294967264 }
 0x4d6   :  { %485 = vsyncpa [#allocation8], 1 }

</bundles_post_ra>
